<compile_context>
chip_gen: v6e
topology: v6e:2x2x1
jax: 0.10.0
libtpu: 0.0.40
codegen_flags: <defaults>
</compile_context>

<pallas_src>
import functools

import jax
import jax.numpy as jnp
from jax import lax
from jax.experimental import pallas as pl
from jax.experimental.pallas import tpu as pltpu


# ----------------------------------------------------------------------------- kernel
def dit_block_kernel(xin_ref, xcond_ref,                  # (1, S, E), (1, C, E)  f32
                     vec_ref,                             # (16, E) f32 packed vectors
                     bff1_ref,                            # (1, F)  f32
                     wq_ref,                              # (E, E)   bf16
                     wkv_ref,                             # (E, 2E)  bf16  [K | V]
                     wo_ref,                              # (E, E)   bf16
                     w1_ref,                              # (E, F)   bf16
                     w2_ref,                              # (F, E)   bf16
                     o_ref,                               # (1, S, E)
                     *, num_heads):
    f32 = jnp.float32
    bf16 = jnp.bfloat16
    eps = 1e-5

    x_in = xin_ref[0].astype(f32)                         # (S, E) rows that are kept
    x_cd = xcond_ref[0].astype(f32)                       # (C, E) conditioning rows
    S, E = x_in.shape
    H = num_heads
    Dh = E // H
    scale = 1.0 / jnp.sqrt(jnp.float32(Dh))

    # Packed small vectors: one (16, E) slab instead of 9 tiny operands.
    vecs = vec_ref[...]                                   # (16, E) f32
    g1, beta1 = vecs[0:1, :], vecs[1:2, :]
    g2, beta2 = vecs[2:3, :], vecs[3:4, :]
    bq, bk, bv = vecs[4:5, :], vecs[5:6, :], vecs[6:7, :]
    bo = vecs[7:8, :]
    bff2 = vecs[8:9, :]
    bff1 = bff1_ref[...]                                  # (1, F)

    def layernorm(v, gamma, beta):
        mu = jnp.mean(v, axis=-1, keepdims=True)
        var = jnp.mean((v - mu) ** 2, axis=-1, keepdims=True)
        return (v - mu) * lax.rsqrt(var + eps) * gamma + beta

    # ---- LayerNorm 1 (row-independent, so input and conditioning are normed
    #      separately; only the normalized rows are concatenated, in VMEM only).
    xn_in = layernorm(x_in, g1, beta1)                    # (S, E) f32, query rows
    xn_cd = layernorm(x_cd, g1, beta1)                    # (C, E) f32
    xn_all = jnp.concatenate([xn_in, xn_cd], axis=0)      # (T, E) sublane concat

    # ---- Projections: bf16 operands, f32 accumulation on the MXU.
    # Q only for kept rows; K/V fused into a single matmul over all T rows.
    q = jnp.dot(xn_in.astype(bf16), wq_ref[...],
                preferred_element_type=f32) + bq          # (S, E)
    kv = jnp.dot(xn_all.astype(bf16), wkv_ref[...],
                 preferred_element_type=f32)              # (T, 2E)
    k = kv[:, :E] + bk                                    # (T, E)
    v = kv[:, E:] + bv                                    # (T, E)

    # ---- Multi-head self-attention (queries = kept rows only), head-batched.
    # Head slices are extracted once and stacked along a leading batch axis; scores
    # and P@V are single batched dot_generals instead of H small K=Dh matmuls.
    qb = jnp.stack([q[:, h * Dh:(h + 1) * Dh] for h in range(H)], axis=0).astype(bf16)  # (H,S,Dh)
    kb = jnp.stack([k[:, h * Dh:(h + 1) * Dh] for h in range(H)], axis=0).astype(bf16)  # (H,T,Dh)
    vb = jnp.stack([v[:, h * Dh:(h + 1) * Dh] for h in range(H)], axis=0).astype(bf16)  # (H,T,Dh)

    s = jnp.einsum('hsd,htd->hst', qb, kb,
                   preferred_element_type=f32) * scale    # (H, S, T) f32
    s = s - jnp.max(s, axis=-1, keepdims=True)
    p = jnp.exp(s)
    p = p / jnp.sum(p, axis=-1, keepdims=True)            # exact reciprocal (bf16 matmuls
                                                          # already add error; see review)
    ob = jnp.einsum('hst,htd->hsd', p.astype(bf16), vb,
                    preferred_element_type=f32)           # (H, S, Dh) f32

    # One (S, E) x (E, E) output-projection matmul (amortizes MXU fill/drain over all
    # heads) instead of H matmuls with contraction depth Dh.
    o_cat = jnp.concatenate([ob[h] for h in range(H)], axis=-1)          # (S, E)
    attn = jnp.dot(o_cat.astype(bf16), wo_ref[...],
                   preferred_element_type=f32) + bo                      # (S, E)

    # ---- residual (on normed x, per the PyTorch code) + LayerNorm 2 — kept rows only.
    x2 = xn_in + attn
    x2n = layernorm(x2, g2, beta2)

    # ---- FFN: Linear -> exact GELU (erf, matches nn.GELU default) -> Linear.
    h1 = jnp.dot(x2n.astype(bf16), w1_ref[...],
                 preferred_element_type=f32) + bff1                      # (S, F)
    h1 = 0.5 * h1 * (1.0 + lax.erf(h1 * (1.0 / jnp.sqrt(jnp.float32(2.0)))))
    ff = jnp.dot(h1.astype(bf16), w2_ref[...],
                 preferred_element_type=f32) + bff2                      # (S, E)

    o_ref[0] = (x2n + ff).astype(o_ref.dtype)


# ----------------------------------------------------------------------------- wrapper
def dit_block_in_context(input_tokens, conditioning, params, num_heads):
    """input_tokens: (B, S, E), conditioning: (B, C, E) -> (B, S, E)"""
    B, S, E = input_tokens.shape
    C = conditioning.shape[1]
    T = S + C
    F = params["ffn_w1"].shape[0]
    bf16 = jnp.bfloat16

    # Weights pre-transposed (everything is `x @ W` on the MXU) and cast to bf16
    # (MXU-native on v5e/v6e/v7x; halves weight DMA bytes and resident VMEM).
    Wq = params["in_proj_weight"][:E, :].T.astype(bf16)          # (E, E)
    Wkv = params["in_proj_weight"][E:, :].T.astype(bf16)         # (E, 2E) -> [K | V]
    Wo = params["out_proj_weight"].T.astype(bf16)                # (E, E)
    W1 = params["ffn_w1"].T.astype(bf16)                         # (E, F)
    W2 = params["ffn_w2"].T.astype(bf16)                         # (F, E)

    # Pack all E-wide vectors (LN params + biases) into one (16, E) slab so they share
    # a single DMA / double buffer instead of 9 sublane-padded micro-operands.
    vec_rows = jnp.stack([
        params["ln1_weight"], params["ln1_bias"],
        params["ln2_weight"], params["ln2_bias"],
        params["in_proj_bias"][:E],                              # bq
        params["in_proj_bias"][E:2 * E],                         # bk
        params["in_proj_bias"][2 * E:],                          # bv
        params["out_proj_bias"],                                 # bo
        params["ffn_b2"],                                        # bff2
    ], axis=0).astype(jnp.float32)                               # (9, E)
    vec_slab = jnp.zeros((16, E), jnp.float32).at[:9, :].set(vec_rows)
    bff1_2d = params["ffn_b1"].reshape(1, F).astype(jnp.float32)

    const = lambda shape: pl.BlockSpec(shape, lambda b: (0,) * len(shape))

    # Advisory cost estimate so XLA schedules surrounding ops correctly.
    flops_per_b = (
        2 * T * E * (2 * E)          # fused K/V projection
        + 2 * S * E * E              # Q projection
        + 2 * S * T * E * 2          # scores + P@V (all heads)
        + 2 * S * E * E              # output projection
        + 2 * S * E * F * 2          # FFN
    )
    transc_per_b = num_heads * S * T + S * F                     # softmax exp + gelu erf
    bytes_accessed = (
        (input_tokens.size + conditioning.size + B * S * E) * 4  # f32 activations
        + (Wq.size + Wkv.size + Wo.size + W1.size + W2.size) * 2 # bf16 weights
        + (vec_slab.size + bff1_2d.size) * 4
    )
    cost = pl.CostEstimate(flops=B * flops_per_b,
                           transcendentals=B * transc_per_b,
                           bytes_accessed=int(bytes_accessed))

    out = pl.pallas_call(
        functools.partial(dit_block_kernel, num_heads=num_heads),
        out_shape=jax.ShapeDtypeStruct((B, S, E), input_tokens.dtype),
        grid_spec=pltpu.PrefetchScalarGridSpec(
            num_scalar_prefetch=0,
            grid=(B,),
            in_specs=[
                pl.BlockSpec((1, S, E), lambda b: (b, 0, 0)),    # input tokens
                pl.BlockSpec((1, C, E), lambda b: (b, 0, 0)),    # conditioning
                const((16, E)),                                  # packed LN/bias slab
                const((1, F)),                                   # FFN bias 1
                const((E, E)),                                   # Wq (bf16)
                const((E, 2 * E)),                               # Wkv (bf16)
                const((E, E)),                                   # Wo (bf16)
                const((E, F)),                                   # W1 (bf16)
                const((F, E)),                                   # W2 (bf16)
            ],
            out_specs=pl.BlockSpec((1, S, E), lambda b: (b, 0, 0)),
        ),
        compiler_params=pltpu.CompilerParams(
            dimension_semantics=("parallel",),
            # Sized for the 64 MiB/TC v7x budget (weights bf16, default double-buffer);
            # at production E/F additionally tile the FFN over F.
            vmem_limit_bytes=48 * 1024 * 1024,
        ),
        cost_estimate=cost,
    )(input_tokens, conditioning, vec_slab, bff1_2d, Wq, Wkv, Wo, W1, W2)
    return out


# ----------------------------------------------------------------------------- pure-JAX reference
def reference(input_tokens, conditioning, params, num_heads):
    E = input_tokens.shape[-1]
    H = num_heads
    Dh = E // H
    x = jnp.concatenate([input_tokens, conditioning], axis=1).astype(jnp.float32)
    eps = 1e-5

    def ln(v, g, b):
        mu = jnp.mean(v, -1, keepdims=True)
        var = jnp.mean((v - mu) ** 2, -1, keepdims=True)
        return (v - mu) / jnp.sqrt(var + eps) * g + b

    xn = ln(x, params["ln1_weight"], params["ln1_bias"])
    qkv = xn @ params["in_proj_weight"].T + params["in_proj_bias"]
    q, k, v = jnp.split(qkv, 3, axis=-1)
    B, T, _ = q.shape
    q = q.reshape(B, T, H, Dh).transpose(0, 2, 1, 3)
    k = k.reshape(B, T, H, Dh).transpose(0, 2, 1, 3)
    v = v.reshape(B, T, H, Dh).transpose(0, 2, 1, 3)
    s = jnp.einsum("bhtd,bhsd->bhts", q, k) / jnp.sqrt(jnp.float32(Dh))
    p = jax.nn.softmax(s, axis=-1)
    a = jnp.einsum("bhts,bhsd->bhtd", p, v).transpose(0, 2, 1, 3).reshape(B, T, E)
    a = a @ params["out_proj_weight"].T + params["out_proj_bias"]
    x2 = xn + a
    x2n = ln(x2, params["ln2_weight"], params["ln2_bias"])
    h1 = x2n @ params["ffn_w1"].T + params["ffn_b1"]
    h1 = 0.5 * h1 * (1.0 + lax.erf(h1 / jnp.sqrt(jnp.float32(2.0))))
    ff = h1 @ params["ffn_w2"].T + params["ffn_b2"]
    out = x2n + ff
    return out[:, :input_tokens.shape[1], :]


# ----------------------------------------------------------------------------- main
if __name__ == "__main__":
    B, S, C_LEN, E, H, F = 2, 8, 8, 32, 4, 64

    key = jax.random.PRNGKey(0)
    ks = jax.random.split(key, 12)

    params = {
        "ln1_weight": jnp.ones((E,), jnp.float32),
        "ln1_bias": jnp.zeros((E,), jnp.float32),
        "in_proj_weight": 0.05 * jax.random.normal(ks[0], (3 * E, E), jnp.float32),
        "in_proj_bias": 0.01 * jax.random.normal(ks[1], (3 * E,), jnp.float32),
        "out_proj_weight": 0.05 * jax.random.normal(ks[2], (E, E), jnp.float32),
        "out_proj_bias": 0.01 * jax.random.normal(ks[3], (E,), jnp.float32),
        "ln2_weight": jnp.ones((E,), jnp.float32),
        "ln2_bias": jnp.zeros((E,), jnp.float32),
        "ffn_w1": 0.05 * jax.random.normal(ks[4], (F, E), jnp.float32),
        "ffn_b1": 0.01 * jax.random.normal(ks[5], (F,), jnp.float32),
        "ffn_w2": 0.05 * jax.random.normal(ks[6], (E, F), jnp.float32),
        "ffn_b2": 0.01 * jax.random.normal(ks[7], (E,), jnp.float32),
    }

    input_tokens = jax.random.normal(ks[8], (B, S, E), jnp.float32)
    conditioning = jax.random.normal(ks[9], (B, C_LEN, E), jnp.float32)

    out = dit_block_in_context(input_tokens, conditioning, params, num_heads=H)
    out = jax.block_until_ready(out)

    ref = reference(input_tokens, conditioning, params, num_heads=H)
    assert out.shape == (B, S, E), out.shape
    # Matmuls use bf16 operands (f32 accumulation); the f32 reference therefore
    # differs at the few-1e-3 level. Softmax uses an exact reciprocal.
    assert jnp.allclose(out, ref, atol=1e-2, rtol=1e-2), float(jnp.max(jnp.abs(out - ref)))

    print("KERNEL_OK")
</pallas_src>

<mosaic_0001>
module attributes {stable_mosaic.version = 11 : i64} {
  func.func @dit_block_kernel(%arg0: i32, %arg1: memref<1x8x32xf32, #tpu.memory_space<vmem>>, %arg2: memref<1x8x32xf32, #tpu.memory_space<vmem>>, %arg3: memref<16x32xf32, #tpu.memory_space<vmem>>, %arg4: memref<1x64xf32, #tpu.memory_space<vmem>>, %arg5: memref<32x32xbf16, #tpu.memory_space<vmem>>, %arg6: memref<32x64xbf16, #tpu.memory_space<vmem>>, %arg7: memref<32x32xbf16, #tpu.memory_space<vmem>>, %arg8: memref<32x64xbf16, #tpu.memory_space<vmem>>, %arg9: memref<64x32xbf16, #tpu.memory_space<vmem>>, %arg10: memref<1x8x32xf32, #tpu.memory_space<vmem>>) attributes {dimension_semantics = [#tpu.dimension_semantics<parallel>], iteration_bounds = array<i64: 2>, scalar_prefetch = 0 : i64, scratch_operands = 0 : i64, tpu.core_type = #tpu.core_type<tc>, window_params = [{transform_indices = @transform_0, window_bounds = array<i64: 1, 8, 32>}, {transform_indices = @transform_1, window_bounds = array<i64: 1, 8, 32>}, {pipeline_mode = #tpu.pipeline_mode<synchronous>, transform_indices = @transform_2, window_bounds = array<i64: 16, 32>}, {pipeline_mode = #tpu.pipeline_mode<synchronous>, transform_indices = @transform_3, window_bounds = array<i64: 1, 64>}, {pipeline_mode = #tpu.pipeline_mode<synchronous>, transform_indices = @transform_4, window_bounds = array<i64: 32, 32>}, {pipeline_mode = #tpu.pipeline_mode<synchronous>, transform_indices = @transform_5, window_bounds = array<i64: 32, 64>}, {pipeline_mode = #tpu.pipeline_mode<synchronous>, transform_indices = @transform_6, window_bounds = array<i64: 32, 32>}, {pipeline_mode = #tpu.pipeline_mode<synchronous>, transform_indices = @transform_7, window_bounds = array<i64: 32, 64>}, {pipeline_mode = #tpu.pipeline_mode<synchronous>, transform_indices = @transform_8, window_bounds = array<i64: 64, 32>}, {transform_indices = @transform_9, window_bounds = array<i64: 1, 8, 32>}]} {
    %c0 = arith.constant 0 : index
    %c0_0 = arith.constant 0 : index
    %c0_1 = arith.constant 0 : index
    %0 = vector.load %arg1[%c0, %c0_0, %c0_1] : memref<1x8x32xf32, #tpu.memory_space<vmem>>, vector<1x8x32xf32>
    %1 = vector.shape_cast %0 : vector<1x8x32xf32> to vector<8x32xf32>
    %c0_2 = arith.constant 0 : index
    %c0_3 = arith.constant 0 : index
    %c0_4 = arith.constant 0 : index
    %2 = vector.load %arg2[%c0_2, %c0_3, %c0_4] : memref<1x8x32xf32, #tpu.memory_space<vmem>>, vector<1x8x32xf32>
    %3 = vector.shape_cast %2 : vector<1x8x32xf32> to vector<8x32xf32>
    %cst = arith.constant 8.000000e+00 : f32
    %4 = math.sqrt %cst : f32
    %cst_5 = arith.constant 1.000000e+00 : f32
    %5 = arith.divf %cst_5, %4 : f32
    %c0_6 = arith.constant 0 : index
    %c0_7 = arith.constant 0 : index
    %6 = vector.load %arg3[%c0_6, %c0_7] : memref<16x32xf32, #tpu.memory_space<vmem>>, vector<16x32xf32>
    %7 = vector.extract_strided_slice %6 {offsets = [0, 0], sizes = [1, 32], strides = [1, 1]} : vector<16x32xf32> to vector<1x32xf32>
    %8 = vector.extract_strided_slice %6 {offsets = [1, 0], sizes = [1, 32], strides = [1, 1]} : vector<16x32xf32> to vector<1x32xf32>
    %9 = vector.extract_strided_slice %6 {offsets = [2, 0], sizes = [1, 32], strides = [1, 1]} : vector<16x32xf32> to vector<1x32xf32>
    %10 = vector.extract_strided_slice %6 {offsets = [3, 0], sizes = [1, 32], strides = [1, 1]} : vector<16x32xf32> to vector<1x32xf32>
    %11 = vector.extract_strided_slice %6 {offsets = [4, 0], sizes = [1, 32], strides = [1, 1]} : vector<16x32xf32> to vector<1x32xf32>
    %12 = vector.extract_strided_slice %6 {offsets = [5, 0], sizes = [1, 32], strides = [1, 1]} : vector<16x32xf32> to vector<1x32xf32>
    %13 = vector.extract_strided_slice %6 {offsets = [6, 0], sizes = [1, 32], strides = [1, 1]} : vector<16x32xf32> to vector<1x32xf32>
    %14 = vector.extract_strided_slice %6 {offsets = [7, 0], sizes = [1, 32], strides = [1, 1]} : vector<16x32xf32> to vector<1x32xf32>
    %15 = vector.extract_strided_slice %6 {offsets = [8, 0], sizes = [1, 32], strides = [1, 1]} : vector<16x32xf32> to vector<1x32xf32>
    %c0_8 = arith.constant 0 : index
    %c0_9 = arith.constant 0 : index
    %16 = vector.load %arg4[%c0_8, %c0_9] : memref<1x64xf32, #tpu.memory_space<vmem>>, vector<1x64xf32>
    %cst_10 = arith.constant dense<0.000000e+00> : vector<8xf32>
    %17 = vector.multi_reduction <add>, %1, %cst_10 [1] : vector<8x32xf32> to vector<8xf32>
    %18 = vector.shape_cast %17 : vector<8xf32> to vector<8x1xf32>
    %cst_11 = arith.constant 3.200000e+01 : f32
    %19 = vector.broadcast %cst_11 : f32 to vector<8x1xf32>
    %20 = arith.divf %18, %19 : vector<8x1xf32>
    %21 = vector.broadcast %20 : vector<8x1xf32> to vector<8x32xf32>
    %22 = arith.subf %1, %21 : vector<8x32xf32>
    %23 = arith.mulf %22, %22 : vector<8x32xf32>
    %cst_12 = arith.constant dense<0.000000e+00> : vector<8xf32>
    %24 = vector.multi_reduction <add>, %23, %cst_12 [1] : vector<8x32xf32> to vector<8xf32>
    %25 = vector.shape_cast %24 : vector<8xf32> to vector<8x1xf32>
    %cst_13 = arith.constant 3.200000e+01 : f32
    %26 = vector.broadcast %cst_13 : f32 to vector<8x1xf32>
    %27 = arith.divf %25, %26 : vector<8x1xf32>
    %28 = vector.broadcast %20 : vector<8x1xf32> to vector<8x32xf32>
    %29 = arith.subf %1, %28 : vector<8x32xf32>
    %cst_14 = arith.constant 9.99999974E-6 : f32
    %30 = vector.broadcast %cst_14 : f32 to vector<8x1xf32>
    %31 = arith.addf %27, %30 : vector<8x1xf32>
    %32 = math.rsqrt %31 : vector<8x1xf32>
    %33 = vector.broadcast %32 : vector<8x1xf32> to vector<8x32xf32>
    %34 = arith.mulf %29, %33 : vector<8x32xf32>
    %35 = vector.broadcast %7 : vector<1x32xf32> to vector<8x32xf32>
    %36 = arith.mulf %34, %35 : vector<8x32xf32>
    %37 = vector.broadcast %8 : vector<1x32xf32> to vector<8x32xf32>
    %38 = arith.addf %36, %37 : vector<8x32xf32>
    %cst_15 = arith.constant dense<0.000000e+00> : vector<8xf32>
    %39 = vector.multi_reduction <add>, %3, %cst_15 [1] : vector<8x32xf32> to vector<8xf32>
    %40 = vector.shape_cast %39 : vector<8xf32> to vector<8x1xf32>
    %cst_16 = arith.constant 3.200000e+01 : f32
    %41 = vector.broadcast %cst_16 : f32 to vector<8x1xf32>
    %42 = arith.divf %40, %41 : vector<8x1xf32>
    %43 = vector.broadcast %42 : vector<8x1xf32> to vector<8x32xf32>
    %44 = arith.subf %3, %43 : vector<8x32xf32>
    %45 = arith.mulf %44, %44 : vector<8x32xf32>
    %cst_17 = arith.constant dense<0.000000e+00> : vector<8xf32>
    %46 = vector.multi_reduction <add>, %45, %cst_17 [1] : vector<8x32xf32> to vector<8xf32>
    %47 = vector.shape_cast %46 : vector<8xf32> to vector<8x1xf32>
    %cst_18 = arith.constant 3.200000e+01 : f32
    %48 = vector.broadcast %cst_18 : f32 to vector<8x1xf32>
    %49 = arith.divf %47, %48 : vector<8x1xf32>
    %50 = vector.broadcast %42 : vector<8x1xf32> to vector<8x32xf32>
    %51 = arith.subf %3, %50 : vector<8x32xf32>
    %cst_19 = arith.constant 9.99999974E-6 : f32
    %52 = vector.broadcast %cst_19 : f32 to vector<8x1xf32>
    %53 = arith.addf %49, %52 : vector<8x1xf32>
    %54 = math.rsqrt %53 : vector<8x1xf32>
    %55 = vector.broadcast %54 : vector<8x1xf32> to vector<8x32xf32>
    %56 = arith.mulf %51, %55 : vector<8x32xf32>
    %57 = vector.broadcast %7 : vector<1x32xf32> to vector<8x32xf32>
    %58 = arith.mulf %56, %57 : vector<8x32xf32>
    %59 = vector.broadcast %8 : vector<1x32xf32> to vector<8x32xf32>
    %60 = arith.addf %58, %59 : vector<8x32xf32>
    %61 = tpu.concatenate %38, %60 in 0 : vector<8x32xf32>, vector<8x32xf32> -> vector<16x32xf32>
    %62 = arith.truncf %38 : vector<8x32xf32> to vector<8x32xbf16>
    %c0_20 = arith.constant 0 : index
    %c0_21 = arith.constant 0 : index
    %63 = vector.load %arg5[%c0_20, %c0_21] : memref<32x32xbf16, #tpu.memory_space<vmem>>, vector<32x32xbf16>
    %cst_22 = arith.constant dense<0.000000e+00> : vector<8x32xf32>
    %64 = tpu.matmul %62, %63, %cst_22 {dimension_numbers = #tpu.dot_dimension_numbers<[1], [0], [0], [1], [0, 0, 1, 1], [], []>} : vector<8x32xbf16>, vector<32x32xbf16>, vector<8x32xf32> -> vector<8x32xf32>
    %65 = vector.broadcast %11 : vector<1x32xf32> to vector<8x32xf32>
    %66 = arith.addf %64, %65 : vector<8x32xf32>
    %67 = arith.truncf %61 : vector<16x32xf32> to vector<16x32xbf16>
    %c0_23 = arith.constant 0 : index
    %c0_24 = arith.constant 0 : index
    %68 = vector.load %arg6[%c0_23, %c0_24] : memref<32x64xbf16, #tpu.memory_space<vmem>>, vector<32x64xbf16>
    %cst_25 = arith.constant dense<0.000000e+00> : vector<16x64xf32>
    %69 = tpu.matmul %67, %68, %cst_25 {dimension_numbers = #tpu.dot_dimension_numbers<[1], [0], [0], [1], [0, 0, 1, 1], [], []>} : vector<16x32xbf16>, vector<32x64xbf16>, vector<16x64xf32> -> vector<16x64xf32>
    %70 = vector.extract_strided_slice %69 {offsets = [0, 0], sizes = [16, 32], strides = [1, 1]} : vector<16x64xf32> to vector<16x32xf32>
    %71 = vector.broadcast %12 : vector<1x32xf32> to vector<16x32xf32>
    %72 = arith.addf %70, %71 : vector<16x32xf32>
    %73 = vector.extract_strided_slice %69 {offsets = [0, 32], sizes = [16, 32], strides = [1, 1]} : vector<16x64xf32> to vector<16x32xf32>
    %74 = vector.broadcast %13 : vector<1x32xf32> to vector<16x32xf32>
    %75 = arith.addf %73, %74 : vector<16x32xf32>
    %76 = vector.extract_strided_slice %66 {offsets = [0, 0], sizes = [8, 8], strides = [1, 1]} : vector<8x32xf32> to vector<8x8xf32>
    %77 = vector.extract_strided_slice %66 {offsets = [0, 8], sizes = [8, 8], strides = [1, 1]} : vector<8x32xf32> to vector<8x8xf32>
    %78 = vector.extract_strided_slice %66 {offsets = [0, 16], sizes = [8, 8], strides = [1, 1]} : vector<8x32xf32> to vector<8x8xf32>
    %79 = vector.extract_strided_slice %66 {offsets = [0, 24], sizes = [8, 8], strides = [1, 1]} : vector<8x32xf32> to vector<8x8xf32>
    %80 = vector.shape_cast %76 : vector<8x8xf32> to vector<1x8x8xf32>
    %81 = vector.shape_cast %77 : vector<8x8xf32> to vector<1x8x8xf32>
    %82 = vector.shape_cast %78 : vector<8x8xf32> to vector<1x8x8xf32>
    %83 = vector.shape_cast %79 : vector<8x8xf32> to vector<1x8x8xf32>
    %84 = tpu.concatenate %80, %81, %82, %83 in 0 : vector<1x8x8xf32>, vector<1x8x8xf32>, vector<1x8x8xf32>, vector<1x8x8xf32> -> vector<4x8x8xf32>
    %85 = arith.truncf %84 : vector<4x8x8xf32> to vector<4x8x8xbf16>
    %86 = vector.extract_strided_slice %72 {offsets = [0, 0], sizes = [16, 8], strides = [1, 1]} : vector<16x32xf32> to vector<16x8xf32>
    %87 = vector.extract_strided_slice %72 {offsets = [0, 8], sizes = [16, 8], strides = [1, 1]} : vector<16x32xf32> to vector<16x8xf32>
    %88 = vector.extract_strided_slice %72 {offsets = [0, 16], sizes = [16, 8], strides = [1, 1]} : vector<16x32xf32> to vector<16x8xf32>
    %89 = vector.extract_strided_slice %72 {offsets = [0, 24], sizes = [16, 8], strides = [1, 1]} : vector<16x32xf32> to vector<16x8xf32>
    %90 = vector.shape_cast %86 : vector<16x8xf32> to vector<1x16x8xf32>
    %91 = vector.shape_cast %87 : vector<16x8xf32> to vector<1x16x8xf32>
    %92 = vector.shape_cast %88 : vector<16x8xf32> to vector<1x16x8xf32>
    %93 = vector.shape_cast %89 : vector<16x8xf32> to vector<1x16x8xf32>
    %94 = tpu.concatenate %90, %91, %92, %93 in 0 : vector<1x16x8xf32>, vector<1x16x8xf32>, vector<1x16x8xf32>, vector<1x16x8xf32> -> vector<4x16x8xf32>
    %95 = arith.truncf %94 : vector<4x16x8xf32> to vector<4x16x8xbf16>
    %96 = vector.extract_strided_slice %75 {offsets = [0, 0], sizes = [16, 8], strides = [1, 1]} : vector<16x32xf32> to vector<16x8xf32>
    %97 = vector.extract_strided_slice %75 {offsets = [0, 8], sizes = [16, 8], strides = [1, 1]} : vector<16x32xf32> to vector<16x8xf32>
    %98 = vector.extract_strided_slice %75 {offsets = [0, 16], sizes = [16, 8], strides = [1, 1]} : vector<16x32xf32> to vector<16x8xf32>
    %99 = vector.extract_strided_slice %75 {offsets = [0, 24], sizes = [16, 8], strides = [1, 1]} : vector<16x32xf32> to vector<16x8xf32>
    %100 = vector.shape_cast %96 : vector<16x8xf32> to vector<1x16x8xf32>
    %101 = vector.shape_cast %97 : vector<16x8xf32> to vector<1x16x8xf32>
    %102 = vector.shape_cast %98 : vector<16x8xf32> to vector<1x16x8xf32>
    %103 = vector.shape_cast %99 : vector<16x8xf32> to vector<1x16x8xf32>
    %104 = tpu.concatenate %100, %101, %102, %103 in 0 : vector<1x16x8xf32>, vector<1x16x8xf32>, vector<1x16x8xf32>, vector<1x16x8xf32> -> vector<4x16x8xf32>
    %105 = arith.truncf %104 : vector<4x16x8xf32> to vector<4x16x8xbf16>
    "tpu.trace_start"() <{level = 10 : i32, message = "hsd,htd->hst"}> : () -> ()
    %cst_26 = arith.constant dense<0.000000e+00> : vector<4x8x16xf32>
    %106 = tpu.matmul %85, %95, %cst_26 {dimension_numbers = #tpu.dot_dimension_numbers<[2], [2], [1], [1], [0, 0, 0, 1, 1, 1], [0], [0]>} : vector<4x8x8xbf16>, vector<4x16x8xbf16>, vector<4x8x16xf32> -> vector<4x8x16xf32>
    "tpu.trace_stop"() : () -> ()
    %107 = vector.broadcast %5 : f32 to vector<4x8x16xf32>
    %108 = arith.mulf %106, %107 : vector<4x8x16xf32>
    %cst_27 = arith.constant dense<0xFF800000> : vector<4x8xf32>
    %109 = vector.multi_reduction <maximumf>, %108, %cst_27 [2] : vector<4x8x16xf32> to vector<4x8xf32>
    %110 = vector.shape_cast %109 : vector<4x8xf32> to vector<4x8x1xf32>
    %111 = vector.broadcast %110 : vector<4x8x1xf32> to vector<4x8x16xf32>
    %112 = arith.subf %108, %111 : vector<4x8x16xf32>
    %113 = math.exp %112 : vector<4x8x16xf32>
    %cst_28 = arith.constant dense<0.000000e+00> : vector<4x8xf32>
    %114 = vector.multi_reduction <add>, %113, %cst_28 [2] : vector<4x8x16xf32> to vector<4x8xf32>
    %115 = vector.shape_cast %114 : vector<4x8xf32> to vector<4x8x1xf32>
    %116 = vector.broadcast %115 : vector<4x8x1xf32> to vector<4x8x16xf32>
    %117 = arith.divf %113, %116 : vector<4x8x16xf32>
    %118 = arith.truncf %117 : vector<4x8x16xf32> to vector<4x8x16xbf16>
    "tpu.trace_start"() <{level = 10 : i32, message = "hst,htd->hsd"}> : () -> ()
    %cst_29 = arith.constant dense<0.000000e+00> : vector<4x8x8xf32>
    %119 = tpu.matmul %118, %105, %cst_29 {dimension_numbers = #tpu.dot_dimension_numbers<[2], [1], [1], [2], [0, 0, 0, 1, 1, 2], [0], [0]>} : vector<4x8x16xbf16>, vector<4x16x8xbf16>, vector<4x8x8xf32> -> vector<4x8x8xf32>
    "tpu.trace_stop"() : () -> ()
    %120 = vector.extract_strided_slice %119 {offsets = [0, 0, 0], sizes = [1, 8, 8], strides = [1, 1, 1]} : vector<4x8x8xf32> to vector<1x8x8xf32>
    %121 = vector.shape_cast %120 : vector<1x8x8xf32> to vector<8x8xf32>
    %122 = vector.extract_strided_slice %119 {offsets = [1, 0, 0], sizes = [1, 8, 8], strides = [1, 1, 1]} : vector<4x8x8xf32> to vector<1x8x8xf32>
    %123 = vector.shape_cast %122 : vector<1x8x8xf32> to vector<8x8xf32>
    %124 = vector.extract_strided_slice %119 {offsets = [2, 0, 0], sizes = [1, 8, 8], strides = [1, 1, 1]} : vector<4x8x8xf32> to vector<1x8x8xf32>
    %125 = vector.shape_cast %124 : vector<1x8x8xf32> to vector<8x8xf32>
    %126 = vector.extract_strided_slice %119 {offsets = [3, 0, 0], sizes = [1, 8, 8], strides = [1, 1, 1]} : vector<4x8x8xf32> to vector<1x8x8xf32>
    %127 = vector.shape_cast %126 : vector<1x8x8xf32> to vector<8x8xf32>
    %128 = tpu.concatenate %121, %123, %125, %127 in 1 : vector<8x8xf32>, vector<8x8xf32>, vector<8x8xf32>, vector<8x8xf32> -> vector<8x32xf32>
    %129 = arith.truncf %128 : vector<8x32xf32> to vector<8x32xbf16>
    %c0_30 = arith.constant 0 : index
    %c0_31 = arith.constant 0 : index
    %130 = vector.load %arg7[%c0_30, %c0_31] : memref<32x32xbf16, #tpu.memory_space<vmem>>, vector<32x32xbf16>
    %cst_32 = arith.constant dense<0.000000e+00> : vector<8x32xf32>
    %131 = tpu.matmul %129, %130, %cst_32 {dimension_numbers = #tpu.dot_dimension_numbers<[1], [0], [0], [1], [0, 0, 1, 1], [], []>} : vector<8x32xbf16>, vector<32x32xbf16>, vector<8x32xf32> -> vector<8x32xf32>
    %132 = vector.broadcast %14 : vector<1x32xf32> to vector<8x32xf32>
    %133 = arith.addf %131, %132 : vector<8x32xf32>
    %134 = arith.addf %38, %133 : vector<8x32xf32>
    %cst_33 = arith.constant dense<0.000000e+00> : vector<8xf32>
    %135 = vector.multi_reduction <add>, %134, %cst_33 [1] : vector<8x32xf32> to vector<8xf32>
    %136 = vector.shape_cast %135 : vector<8xf32> to vector<8x1xf32>
    %cst_34 = arith.constant 3.200000e+01 : f32
    %137 = vector.broadcast %cst_34 : f32 to vector<8x1xf32>
    %138 = arith.divf %136, %137 : vector<8x1xf32>
    %139 = vector.broadcast %138 : vector<8x1xf32> to vector<8x32xf32>
    %140 = arith.subf %134, %139 : vector<8x32xf32>
    %141 = arith.mulf %140, %140 : vector<8x32xf32>
    %cst_35 = arith.constant dense<0.000000e+00> : vector<8xf32>
    %142 = vector.multi_reduction <add>, %141, %cst_35 [1] : vector<8x32xf32> to vector<8xf32>
    %143 = vector.shape_cast %142 : vector<8xf32> to vector<8x1xf32>
    %cst_36 = arith.constant 3.200000e+01 : f32
    %144 = vector.broadcast %cst_36 : f32 to vector<8x1xf32>
    %145 = arith.divf %143, %144 : vector<8x1xf32>
    %146 = vector.broadcast %138 : vector<8x1xf32> to vector<8x32xf32>
    %147 = arith.subf %134, %146 : vector<8x32xf32>
    %cst_37 = arith.constant 9.99999974E-6 : f32
    %148 = vector.broadcast %cst_37 : f32 to vector<8x1xf32>
    %149 = arith.addf %145, %148 : vector<8x1xf32>
    %150 = math.rsqrt %149 : vector<8x1xf32>
    %151 = vector.broadcast %150 : vector<8x1xf32> to vector<8x32xf32>
    %152 = arith.mulf %147, %151 : vector<8x32xf32>
    %153 = vector.broadcast %9 : vector<1x32xf32> to vector<8x32xf32>
    %154 = arith.mulf %152, %153 : vector<8x32xf32>
    %155 = vector.broadcast %10 : vector<1x32xf32> to vector<8x32xf32>
    %156 = arith.addf %154, %155 : vector<8x32xf32>
    %157 = arith.truncf %156 : vector<8x32xf32> to vector<8x32xbf16>
    %c0_38 = arith.constant 0 : index
    %c0_39 = arith.constant 0 : index
    %158 = vector.load %arg8[%c0_38, %c0_39] : memref<32x64xbf16, #tpu.memory_space<vmem>>, vector<32x64xbf16>
    %cst_40 = arith.constant dense<0.000000e+00> : vector<8x64xf32>
    %159 = tpu.matmul %157, %158, %cst_40 {dimension_numbers = #tpu.dot_dimension_numbers<[1], [0], [0], [1], [0, 0, 1, 1], [], []>} : vector<8x32xbf16>, vector<32x64xbf16>, vector<8x64xf32> -> vector<8x64xf32>
    %160 = vector.broadcast %16 : vector<1x64xf32> to vector<8x64xf32>
    %161 = arith.addf %159, %160 : vector<8x64xf32>
    %cst_41 = arith.constant 5.000000e-01 : f32
    %162 = vector.broadcast %cst_41 : f32 to vector<8x64xf32>
    %163 = arith.mulf %162, %161 : vector<8x64xf32>
    %cst_42 = arith.constant 2.000000e+00 : f32
    %164 = math.sqrt %cst_42 : f32
    %cst_43 = arith.constant 1.000000e+00 : f32
    %165 = arith.divf %cst_43, %164 : f32
    %166 = vector.broadcast %165 : f32 to vector<8x64xf32>
    %167 = arith.mulf %161, %166 : vector<8x64xf32>
    %168 = math.erf %167 : vector<8x64xf32>
    %cst_44 = arith.constant 1.000000e+00 : f32
    %169 = vector.broadcast %cst_44 : f32 to vector<8x64xf32>
    %170 = arith.addf %169, %168 : vector<8x64xf32>
    %171 = arith.mulf %163, %170 : vector<8x64xf32>
    %172 = arith.truncf %171 : vector<8x64xf32> to vector<8x64xbf16>
    %c0_45 = arith.constant 0 : index
    %c0_46 = arith.constant 0 : index
    %173 = vector.load %arg9[%c0_45, %c0_46] : memref<64x32xbf16, #tpu.memory_space<vmem>>, vector<64x32xbf16>
    %cst_47 = arith.constant dense<0.000000e+00> : vector<8x32xf32>
    %174 = tpu.matmul %172, %173, %cst_47 {dimension_numbers = #tpu.dot_dimension_numbers<[1], [0], [0], [1], [0, 0, 1, 1], [], []>} : vector<8x64xbf16>, vector<64x32xbf16>, vector<8x32xf32> -> vector<8x32xf32>
    %175 = vector.broadcast %15 : vector<1x32xf32> to vector<8x32xf32>
    %176 = arith.addf %174, %175 : vector<8x32xf32>
    %177 = arith.addf %156, %176 : vector<8x32xf32>
    %c0_48 = arith.constant 0 : index
    %c0_49 = arith.constant 0 : index
    %c0_50 = arith.constant 0 : index
    %178 = vector.load %arg10[%c0_48, %c0_49, %c0_50] : memref<1x8x32xf32, #tpu.memory_space<vmem>>, vector<1x8x32xf32>
    %179 = vector.shape_cast %178 : vector<1x8x32xf32> to vector<8x32xf32>
    %180 = vector.shape_cast %177 : vector<8x32xf32> to vector<1x8x32xf32>
    tpu.vector_store %arg10[%c0_48, %c0_49, %c0_50], %180 {strides = array<i32>} : memref<1x8x32xf32, #tpu.memory_space<vmem>>, vector<1x8x32xf32>,
    return
  }
  func.func @transform_0(%arg0: i32) -> (i32, i32, i32) {
    %c0_i32 = arith.constant 0 : i32
    %c0_i32_0 = arith.constant 0 : i32
    %c0_i32_1 = arith.constant 0 : i32
    return %arg0, %c0_i32, %c0_i32_0 : i32, i32, i32
  }
  func.func @transform_1(%arg0: i32) -> (i32, i32, i32) {
    %c0_i32 = arith.constant 0 : i32
    %c0_i32_0 = arith.constant 0 : i32
    %c0_i32_1 = arith.constant 0 : i32
    return %arg0, %c0_i32, %c0_i32_0 : i32, i32, i32
  }
  func.func @transform_2(%arg0: i32) -> (i32, i32) {
    %c0_i32 = arith.constant 0 : i32
    %c0_i32_0 = arith.constant 0 : i32
    %c0_i32_1 = arith.constant 0 : i32
    return %c0_i32, %c0_i32_0 : i32, i32
  }
  func.func @transform_3(%arg0: i32) -> (i32, i32) {
    %c0_i32 = arith.constant 0 : i32
    %c0_i32_0 = arith.constant 0 : i32
    %c0_i32_1 = arith.constant 0 : i32
    return %c0_i32, %c0_i32_0 : i32, i32
  }
  func.func @transform_4(%arg0: i32) -> (i32, i32) {
    %c0_i32 = arith.constant 0 : i32
    %c0_i32_0 = arith.constant 0 : i32
    %c0_i32_1 = arith.constant 0 : i32
    return %c0_i32, %c0_i32_0 : i32, i32
  }
  func.func @transform_5(%arg0: i32) -> (i32, i32) {
    %c0_i32 = arith.constant 0 : i32
    %c0_i32_0 = arith.constant 0 : i32
    %c0_i32_1 = arith.constant 0 : i32
    return %c0_i32, %c0_i32_0 : i32, i32
  }
  func.func @transform_6(%arg0: i32) -> (i32, i32) {
    %c0_i32 = arith.constant 0 : i32
    %c0_i32_0 = arith.constant 0 : i32
    %c0_i32_1 = arith.constant 0 : i32
    return %c0_i32, %c0_i32_0 : i32, i32
  }
  func.func @transform_7(%arg0: i32) -> (i32, i32) {
    %c0_i32 = arith.constant 0 : i32
    %c0_i32_0 = arith.constant 0 : i32
    %c0_i32_1 = arith.constant 0 : i32
    return %c0_i32, %c0_i32_0 : i32, i32
  }
  func.func @transform_8(%arg0: i32) -> (i32, i32) {
    %c0_i32 = arith.constant 0 : i32
    %c0_i32_0 = arith.constant 0 : i32
    %c0_i32_1 = arith.constant 0 : i32
    return %c0_i32, %c0_i32_0 : i32, i32
  }
  func.func @transform_9(%arg0: i32) -> (i32, i32, i32) {
    %c0_i32 = arith.constant 0 : i32
    %c0_i32_0 = arith.constant 0 : i32
    %c0_i32_1 = arith.constant 0 : i32
    return %arg0, %c0_i32, %c0_i32_0 : i32, i32, i32
  }
}

</mosaic_0001>

<bundles_post_ra>
// kernel: tpu_custom_call.1
= control target key start
LH: loop header
LB: loop body
LE: loop exit
PB: predicated region body
PF: predicated region fallthrough
CT: control target
= control target key end

     0   :  { %14 = vsyncpa [#allocation3], 0  ;;  %s2365_s0 = inlined_call_operand.vmem [shape: f32[2,8,32], index: 0, kind: input, shape index: {}]   ;;  %s2366_s1 = inlined_call_operand.vmem [shape: f32[2,8,32], index: 1, kind: input, shape index: {}]   ;;  %s2367_s2 = inlined_call_operand.vmem [shape: f32[16,32], index: 2, kind: input, shape index: {}]   ;;  %s2368_s3 = inlined_call_operand.vmem [shape: f32[1,64], index: 3, kind: input, shape index: {}]   ;;  %s2369_s4 = inlined_call_operand.hbm [shape: bf16[32,32], index: 4, kind: input, shape index: {}]   ;;  %s2370_s5 = inlined_call_operand.hbm [shape: bf16[32,64], index: 5, kind: input, shape index: {}]   ;;  %s2371_s6 = inlined_call_operand.hbm [shape: bf16[32,32], index: 6, kind: input, shape index: {}]   ;;  %s2372_s7 = inlined_call_operand.hbm [shape: bf16[32,64], index: 7, kind: input, shape index: {}]   ;;  %s2373_s8 = inlined_call_operand.vmem [shape: bf16[64,32], index: 8, kind: input, shape index: {}]   ;;  %s2374_s9 = inlined_call_operand.hbm [shape: f32[2,8,32], index: 9, kind: output, shape index: {}]  }
   0x1   :  { %15 = vsyncpa [#allocation6], 0 }
   0x2   :  { %16 = vsyncpa [#allocation9], 0 }
   0x3   :  { %17 = vsyncpa [#allocation4], 0 }
   0x4   :  { %19 = vsyncpa [#allocation4 + $0x1], 0  ;;  %s2036_s30 = smov 0   ;;  %s2038_s10 = smov 0  }
   0x5   :  { %s2040_s11 = smov 0   ;;  %s2042_s12 = smov 0  }
   0x6 LB: > { %s2057_s13 = sadd.s32 4294967295, %s1967_s12   ;;  %s1463_s14 = sadd.s32 4294967294, %s1967_s12   ;;  %s1967_s12 = sphi %s2042_s12, %s2382_s12   ;;  %s1963_s11 = sphi %s2040_s11, %s2381_s11   ;;  %s1959_s10 = sphi %s2038_s10, %s2380_s10   ;;  %s1955_s30 = sphi %s2036_s30, %s2379_s30  }
   0x7   : > { %s2061_s15 = sadd.s32 1, %s1967_s12   ;;  %s231_s16 = sadd.s32 1, %s1963_s11 }
   0x8   : > { %s228_s17 = ssub.s32 %s1967_s12, %s2061_s15  ;;  %p241_p0 = scmp.ne.s32.totalorder %s1963_s11, %s1959_s10 }
   0x9   : > { %p229_p1 = scmp.eq.s32.totalorder %s228_s17, 0  ;;  %p242_p2 = scmp.eq.s32.totalorder %s2057_s13, 1 }
   0xa   : > { %p247_p3 = scmp.ne.s32.totalorder %s1959_s10, %s1955_s30  ;;  %p248_p4 = scmp.eq.s32.totalorder %s1463_s14, 1 }
   0xb   : > { %s2072_s18 = scalar_select %p229_p1, %s1963_s11, %s231_s16  }
   0xc   : > { %p2074_p5 = por %p242_p2, %p241_p0  ;;  %p2078_p6 = por %p248_p4, %p247_p3 }
   0xd   : > { %p1464_p7 = scmp.ge.s32.totalorder %s1967_s12, 1  ;;  %p255_p8 = scmp.lt.s32.totalorder %s1967_s12, 3 }
   0xe   : > { %p1668_p9 = scmp.eq.s32.totalorder %s2057_s13, 0  ;;  %s1969_s22 = smov [#allocation5]  }
   0xf   : > { %p2085_p10 = pnand %p1464_p7, %p255_p8  ;;  %s286_s23 = sshll.u32 %s1969_s22, 4  ;;  %s287_s23 = int_to_ptr.vmem [resolvable:$true] %s286_s23 }
  0x10   : > { %s1970_s25 = smov [#allocation2]   ;;  %s1971_s27 = smov [#allocation7]  }
  0x11   : > { %p1651_p11 = pneg %p2085_p10  ;;  %s273_s26 = sshll.u32 %s1970_s25, 4  ;;  %s274_s26 = int_to_ptr.vmem [resolvable:$true] %s273_s26 }
  0x12   : > { %s299_s28 = sshll.u32 %s1971_s27, 4  ;;  %s1802_s29 = scalar_lea.vmem %s287_s23, 256  ;;  %s300_s28 = int_to_ptr.vmem [resolvable:$true] %s299_s28 }
  0x13   : > { %p2093_p12 = pnand %p1668_p9, %p1651_p11  ;;  %p1803_p0 = scmp.ne.s32.totalorder %s287_s23, %s1802_s29 }
  0x14   : > { %p1810_p3 = scmp.lt.s32.totalorder %s287_s23, %s287_s23  ;;  %p1811_p4 = scmp.lt.s32.totalorder %s1802_s29, %s1802_s29 }
  0x15   : > { %p1793_p13 = pneg %p2093_p12 }
  0x16   : > { %p1812_p7 = por %p1811_p4, %p1810_p3 }
  0x17   : > { %p1805_p1 = pnand %p1803_p0, %p1793_p13 }
  0x19   : > { %p1806_p2 = pneg %p1805_p1 }
  0x1b   : > { %p1813_p8 = pnand %p1812_p7, %p1806_p2 }
  0x1d   : > { %1816 = shalt.err (!%p1813_p8)
}
  0x1e   : > { %s1972_s14 = smov 64   ;;  %s1973_s16 = smov 4  }
  0x1f   : > { %1657 = dma.hbm_to_vmem [thread:$0]  (!%p2093_p12), %s2370_s5, 256, %s287_s23, [#allocation6], %s1972_s14, %s1972_s14, %s1973_s16  }
  0x20   : > { %s1828_s25 = scalar_lea.vmem %s274_s26, 256  ;;  %p1836_p2 = scmp.lt.s32.totalorder %s274_s26, %s274_s26 }
  0x21   : > { %p1829_p11 = scmp.ne.s32.totalorder %s274_s26, %s1828_s25  ;;  %p1837_p3 = scmp.lt.s32.totalorder %s1828_s25, %s1828_s25 }
  0x23   : > { %p1831_p0 = pnand %p1829_p11, %p1793_p13  ;;  %p1838_p4 = por %p1837_p3, %p1836_p2 }
  0x25   : > { %p1832_p1 = pneg %p1831_p0 }
  0x27   : > { %p1839_p7 = pnand %p1838_p4, %p1832_p1 }
  0x29   : > { %1842 = shalt.err (!%p1839_p7)
}
  0x2a   : > { %1654 = dma.hbm_to_vmem [thread:$0]  (!%p2093_p12), %s2369_s4, 256, %s274_s26, [#allocation3], %s1972_s14, %s1972_s14, %s1973_s16  }
  0x2b   : > { %s1854_s23 = scalar_lea.vmem %s300_s28, 256  ;;  %p1862_p2 = scmp.lt.s32.totalorder %s300_s28, %s300_s28 }
  0x2c   : > { %p1855_p8 = scmp.ne.s32.totalorder %s300_s28, %s1854_s23  ;;  %p1863_p1 = scmp.lt.s32.totalorder %s1854_s23, %s1854_s23 }
  0x2e   : > { %p1857_p11 = pnand %p1855_p8, %p1793_p13  ;;  %p1864_p3 = por %p1863_p1, %p1862_p2 }
  0x30   : > { %p1858_p0 = pneg %p1857_p11 }
  0x32   : > { %p1865_p4 = pnand %p1864_p3, %p1858_p0 }
  0x34   : > { %1868 = shalt.err (!%p1865_p4)
}
  0x35   : > { %1660 = dma.hbm_to_vmem [thread:$0]  (!%p2093_p12), %s2371_s6, 256, %s300_s28, [#allocation6], %s1972_s14, %s1972_s14, %s1973_s16  }
  0x36   : > { %s1974_s26 = smov [#allocation8]  }
  0x37   : > { %s312_s25 = sshll.u32 %s1974_s26, 4  ;;  %s313_s25 = int_to_ptr.vmem [resolvable:$true] %s312_s25 }
  0x38   : > { %s1880_s27 = scalar_lea.vmem %s313_s25, 256  ;;  %p1888_p0 = scmp.lt.s32.totalorder %s313_s25, %s313_s25 }
  0x39   : > { %p1881_p7 = scmp.ne.s32.totalorder %s313_s25, %s1880_s27  ;;  %p1889_p2 = scmp.lt.s32.totalorder %s1880_s27, %s1880_s27 }
  0x3b   : > { %p1883_p8 = pnand %p1881_p7, %p1793_p13  ;;  %p1890_p1 = por %p1889_p2, %p1888_p0 }
  0x3d   : > { %p1884_p11 = pneg %p1883_p8 }
  0x3f   : > { %p1891_p3 = pnand %p1890_p1, %p1884_p11 }
  0x41   : > { %1894 = shalt.err (!%p1891_p3)
}
  0x42   : > { %1663 = dma.hbm_to_vmem [thread:$0]  (!%p2093_p12), %s2372_s7, 256, %s313_s25, [#allocation9], %s1972_s14, %s1972_s14, %s1973_s16  }
  0x43   : > { %345 = sbr.rel (%p2085_p10) target bundleno = 2518 (0x9d6), region = 56 }
  0x48   : > { %1938 = dma.done.wait (%p1668_p9), [#allocation3], 256  }
  0x49   : > { %1940 = vsyncadd (%p1668_p9), [#allocation3], 4294967040 }
  0x4a   : > { %1942 = dma.done.wait (%p1668_p9), [#allocation6], 512  }
  0x4b   : > { %1944 = vsyncadd (%p1668_p9), [#allocation6], 4294966784 }
  0x4c   : > { %1946 = dma.done.wait (%p1668_p9), [#allocation9], 256  }
  0x4d   : > { %1948 = vsyncadd (%p1668_p9), [#allocation9], 4294967040  ;;  %p396_p10 = scmp.lt.s32.totalorder %s2057_s13, 1  ;;  %vm410_vm0 = vcmask 261120   ;;  %v1755_v14 = vld [vmem:[#allocation2 + $0x8] sm:$0xff]   ;;  %v1975_v15 = vmov 0.0   ;;  %v425_v22 = vlaneseq }
  0x4e   : > { %1541 = vmatprep.subr.bf16.mxu1 %v1975_v15  ;;  %1557 = vmatprep.subr.bf16.mxu0 %v1975_v15  ;;  %v1756_v16 = vld [vmem:[#allocation2] sm:$0xff]   ;;  %vm1976_vm1 = vmmov 0   ;;  %v1757_v36 = vld [vmem:[#allocation5 + $0x8] sm:$0xff]   ;;  %v1758_v39 = vld [vmem:[#allocation5] sm:$0xff]   ;;  %s1977_s28 = smov 120   ;;  %vm653_vm2 = vcmask 64512  }
  0x4f   : > { %s397_s21 = scalar_select %p396_p10, %s2057_s13, 1  ;;  %1542 = vmatpush3.bf16.msra.mxu1 %v1755_v14  ;;  %1545 = vmatprep.mubr.msk.bf16.mxu1 %vm1976_vm1, %v1975_v15  ;;  %v2177_v24 = vshrl.u32 %v425_v22, 7  ;;  %v2183_v26 = vld [vmem:[%s2367_s2] sm:$0xff]  ;;  %vm842_vm3 = vcmask 130048   ;;  %vm1093_vm4 = vcmask 195584   ;;  %vm1291_vm5 = vcmask 523264  }
  0x50   : > { %1543 = vmatprep.subr.bf16.mxu1 %v1975_v15  ;;  %1559 = vmatprep.mubr.msk.bf16.mxu0 %vm1976_vm1, %v1975_v15  ;;  %s1978_s29 = smov 112   ;;  %s1981_s14 = smov 96  }
  0x51   : > { %s1476_s24 = sshll.u32 %s397_s21, 3  ;;  %v427_v25 = vsub.s32 0, %v2177_v24  ;;  %v432_v27 = vsub.s32 1, %v2177_v24  ;;  %v457_v42 = vsub.s32 4, %v2177_v24  ;;  %v577_v48 = vsub.s32 5, %v2177_v24  ;;  %s1979_s21 = smov 104  }
  0x52   : > { %s399_s23 = scalar_lea.vmem %s2365_s0, %s1476_s24  ;;  %s403_s26 = scalar_lea.vmem %s2366_s1, %s1476_s24  ;;  %v583_v60 = vsub.s32 6, %v2177_v24 }
  0x53   : > { %v405_v0 = vld [vmem:[%s399_s23] sm:$0xff]  ;;  %1544 = vmatpush3.bf16.msra.mxu1 %v1756_v16  ;;  %v428_v28 = vrot.slane %v2183_v26, %v427_v25  ;;  %v433_v31 = vrot.slane %v2183_v26, %v432_v27  ;;  %v458_v43 = vrot.slane %v2183_v26, %v457_v42  ;;  %v578_v51 = vrot.slane %v2183_v26, %v577_v48  ;;  %s1980_s24 = smov 32   ;;  %s1982_s16 = smov 8  }
  0x54   : > { %v406_v1 = vld [vmem:[%s403_s26] sm:$0xff]  ;;  %v411_v2 = vsel %vm410_vm0, %v405_v0, 0.0  ;;  %1549 = vmatprep.subr.bf16.mxu1 %v1975_v15  ;;  %v584_v61 = vrot.slane %v2183_v26, %v583_v60  ;;  %s1983_s23 = smov 16   ;;  %s1984_s17 = smov 24  }
  0x55   : > { %v435_v3 = vsel %vm410_vm0, %v406_v1, 0.0  ;;  %412 = vadd.xlane.f32.xlu0 %v411_v2  ;;  %s1505_s25 = sshll.u32 %s2057_s13, 7 }
  0x59   : > { %436 = vadd.xlane.f32.xlu0 %v435_v3 }
  0xde   : > { %v413_v4 = vpop.xlane.xlu0 %412 }
  0xdf   : > { %v415_v5 = vmul.f32 0.03125, %v413_v4 }
  0xe1   : > { %v416_v6 = vsub.f32 %v405_v0, %v415_v5 }
  0xe2   : > { %v437_v7 = vpop.xlane.xlu0 %436 }
  0xe3   : > { %v438_v8 = vmul.f32 0.03125, %v437_v7  ;;  %v417_v9 = vmul.f32 %v416_v6, %v416_v6 }
  0xe5   : > { %v439_v10 = vsub.f32 %v406_v1, %v438_v8  ;;  %v418_v11 = vsel %vm410_vm0, %v417_v9, 0.0 }
  0xe6   : > { %419 = vadd.xlane.f32.xlu1 %v418_v11 }
  0xe7   : > { %v440_v12 = vmul.f32 %v439_v10, %v439_v10 }
  0xe9   : > { %v441_v13 = vsel %vm410_vm0, %v440_v12, 0.0 }
  0xea   : > { %442 = vadd.xlane.f32.xlu1 %v441_v13 }
 0x16f   : > { %v420_v17 = vpop.xlane.xlu1 %419 }
 0x170   : > { %v421_v18 = vmul.f32 0.03125, %v420_v17 }
 0x172   : > { %v422_v19 = vadd.f32 1e-05, %v421_v18 }
 0x173   : > { %v443_v20 = vpop.xlane.xlu1 %442 }
 0x174   : > { %1767 = vrsqrt.f32 %v422_v19  ;;  %v444_v21 = vmul.f32 0.03125, %v443_v20 }
 0x176   : > { %v445_v23 = vadd.f32 1e-05, %v444_v21 }
 0x178   : > { %1769 = vrsqrt.f32 %v445_v23 }
 0x181   : > { %v1768_v29 = vpop.eup %1767 }
 0x182   : > { %v424_v30 = vmul.f32 %v1768_v29, %v416_v6 }
 0x184   : > { %v429_v32 = vmul.f32 %v428_v28, %v424_v30 }
 0x185   : > { %v1770_v33 = vpop.eup %1769 }
 0x186   : > { %v447_v34 = vmul.f32 %v1770_v33, %v439_v10  ;;  %v2190_v35 = vadd.f32 %v433_v31, %v429_v32 }
 0x188   : > { %v450_v37 = vpack.c.bf16 %v2190_v35, %v2190_v35  ;;  %v448_v38 = vmul.f32 %v447_v34, %v428_v28 }
 0x18a   : > { %1546 = vmatmul.mubr.msk.bf16.vlgmr.msra.gmra.mxu1 %vm410_vm0, %v450_v37  ;;  %v449_v40 = vadd.f32 %v448_v38, %v433_v31 }
 0x18b   : > { %1550 = vmatpush3.bf16.msra.mxu1 %v1757_v36  ;;  %1553 = vmatprep.mubr.msk.bf16.mxu1 %vm1976_vm1, %v1975_v15 }
 0x18c   : > { %1551 = vmatprep.subr.bf16.mxu1 %v1975_v15  ;;  %v514_v41 = vpack.c.bf16 %v449_v40, %v2190_v35 }
 0x18f   : > { %1552 = vmatpush3.bf16.msra.mxu1 %v1758_v39 }
 0x190   : > { %1563 = vmatprep.subr.bf16.mxu1 %v1975_v15 }
 0x192   : > { %1554 = vmatmul.mubr.msk.bf16.vlgmr.msra.gmra.mxu1 %vm410_vm0, %v514_v41 }
 0x193   : > { %1565 = vmatprep.mubr.msk.bf16.mxu1 %vm1976_vm1, %v1975_v15 }
 0x24a   : > { %v508_v44 = vpop.f32.mrf.mxu1 }
 0x24b   : > { %v509_v45 = vadd.f32 %v508_v44, %v458_v43 }
 0x24c   : > { %v1547_v46 = vpop.f32.mrf.mxu1 }
 0x24d   : > { %592 = vrot.lane.b32.xlu1 %v509_v45, %s1977_s28  ;;  %v601_v62 = vpack.c.bf16 %v509_v45, %v509_v45 }
 0x24e   : > { %v511_v47 = vpop.f32.mrf.mxu1 }
 0x250   : > { %v1548_v49 = vpop.f32.mrf.mxu1 }
 0x252   : > { %v568_v50 = vpop.f32.mrf.mxu1 }
 0x253   : > { %v579_v54 = vadd.f32 %v578_v51, %v568_v50 }
 0x254   : > { %v1555_v52 = vpop.f32.mrf.mxu1 }
 0x256   : > { %v571_v53 = vpop.f32.mrf.mxu1 }
 0x257   : > { %v580_v55 = vadd.f32 %v578_v51, %v571_v53 }
 0x258   : > { %v1556_v56 = vpop.f32.mrf.mxu1 }
 0x259   : > { %v1730_v57 = vpack.i.bf16 %v580_v55, %v579_v54  ;;  %v625_v58 = vpack.c.bf16 %v580_v55, %v579_v54 }
 0x25b   : > { %1731 = vrot.lane.b32.xlu1 %v1730_v57, %s1978_s29  ;;  %1726 = vrot.lane.b32.xlu0 %v1730_v57, %s1977_s28  ;;  %v658_v59 = vsel %vm653_vm2, %v625_v58, 0 }
 0x25c   : > { %1558 = vmatpush3.bf16.xpose.msra.mxu0 %v658_v59 }
 0x25d   : > { %1569 = vmatprep.subr.bf16.mxu0 %v1975_v15 }
 0x25f   : > { %1736 = vrot.lane.b32.xlu1 %v1730_v57, %s1979_s21  ;;  %595 = vrot.lane.b32.xlu0 %v509_v45, %s1978_s29 }
 0x263   : > { %598 = vrot.lane.b32.xlu1 %v509_v45, %s1979_s21  ;;  %586 = vrot.lane.b32.xlu0 %v584_v61, %s1980_s24  ;;  %s2323_s24 = scalar_lea.hbm %s2374_s9, %s1505_s25 }
 0x264   : > { %1560 = vmatmul.mubr.msk.bf16.vlgmr.msra.gmra.mxu0 %vm653_vm2, %v601_v62 }
 0x265   : > { %1571 = vmatprep.mubr.msk.bf16.mxu0 %vm1976_vm1, %v1975_v15 }
 0x2bf   : > { %v593_v63 = vpop.permute.xlu1 %592 }
 0x2c0   : > { %v602_v19 = vpack.c.bf16 %v593_v63, %v593_v63 }
 0x2cd   : > { %v1727_v0 = vpop.permute.xlu0 %1726  ;;  %v1732_v1 = vpop.permute.xlu1 %1731 }
 0x2ce   : > { %v1729_v2 = vunpack.i.h.bf16 %v1727_v0  ;;  %v1728_v3 = vunpack.i.l.bf16 %v1727_v0  ;;  %v1734_v4 = vunpack.i.h.bf16 %v1732_v1  ;;  %v1733_v5 = vunpack.i.l.bf16 %v1732_v1 }
 0x2d0   : > { %v626_v6 = vpack.c.bf16 %v1729_v2, %v1728_v3  ;;  %v627_v7 = vpack.c.bf16 %v1734_v4, %v1733_v5 }
 0x2d1   : > { %v596_v8 = vpop.permute.xlu0 %595  ;;  %v1737_v9 = vpop.permute.xlu1 %1736 }
 0x2d2   : > { %v1739_v10 = vunpack.i.h.bf16 %v1737_v9  ;;  %v1738_v11 = vunpack.i.l.bf16 %v1737_v9  ;;  %v704_v12 = vsel %vm653_vm2, %v626_v6, 0  ;;  %v750_v13 = vsel %vm653_vm2, %v627_v7, 0 }
 0x2d3   : > { %1564 = vmatpush3.bf16.xpose.msra.mxu1 %v704_v12  ;;  %1570 = vmatpush3.bf16.xpose.msra.mxu0 %v750_v13  ;;  %v603_v22 = vpack.c.bf16 %v596_v8, %v596_v8 }
 0x2d4   : > { %1575 = vmatprep.subr.bf16.mxu1 %v1975_v15  ;;  %1581 = vmatprep.subr.bf16.mxu0 %v1975_v15  ;;  %v628_v16 = vpack.c.bf16 %v1739_v10, %v1738_v11 }
 0x2d5   : > { %v587_v14 = vpop.permute.xlu0 %586  ;;  %v599_v27 = vpop.permute.xlu1 %598 }
 0x2d6   : > { %v2224_v17 = vadd.f32 %v587_v14, %v568_v50  ;;  %v2226_v18 = vadd.f32 %v587_v14, %v571_v53  ;;  %v796_v23 = vsel %vm653_vm2, %v628_v16, 0  ;;  %v604_v28 = vpack.c.bf16 %v599_v27, %v599_v27 }
 0x2d8   : > { %v1745_v20 = vpack.i.bf16 %v2226_v18, %v2224_v17  ;;  %v649_v21 = vpack.c.bf16 %v2226_v18, %v2224_v17 }
 0x2da   : > { %1566 = vmatmul.mubr.msk.bf16.vlgmr.msra.gmra.mxu1 %vm653_vm2, %v602_v19  ;;  %1572 = vmatmul.mubr.msk.bf16.vlgmr.msra.gmra.mxu0 %vm653_vm2, %v603_v22 }
 0x2db   : > { %1576 = vmatpush3.bf16.xpose.msra.mxu1 %v796_v23  ;;  %1577 = vmatprep.mubr.msk.bf16.mxu1 %vm1976_vm1, %v1975_v15 }
 0x2dc   : > { %1587 = vmatprep.subr.bf16.mxu1 %v1975_v15  ;;  %1583 = vmatprep.mubr.msk.bf16.mxu0 %vm1976_vm1, %v1975_v15 }
 0x2e2   : > { %1578 = vmatmul.mubr.msk.bf16.vlgmr.msra.gmra.mxu1 %vm653_vm2, %v604_v28 }
 0x2e3   : > { %1589 = vmatprep.mubr.msk.bf16.mxu1 %vm1976_vm1, %v1975_v15 }
 0x324   : > { %v694_v29 = vpop.f32.mrf.mxu0 }
 0x325   : > { %v838_v30 = vmul.f32 0.35355338, %v694_v29 }
 0x326   : > { %v1561_v31 = vpop.f32.mrf.mxu0 }
 0x327   : > { %v843_v32 = vsel %vm842_vm3, %v838_v30, -inf }
 0x328   : > { %844 = vmax.xlane.f32.xlu1 %v843_v32  ;;  %v697_v33 = vpop.f32.mrf.mxu0 }
 0x32a   : > { %v1562_v34 = vpop.f32.mrf.mxu0 }
 0x339   : > { %1741 = vrot.lane.b32.xlu1 %v1745_v20, %s1977_s28 }
 0x33d   : > { %1751 = vrot.lane.b32.xlu1 %v1745_v20, %s1979_s21 }
 0x39a   : > { %v740_v36 = vpop.f32.mrf.mxu1  ;;  %v786_v38 = vpop.f32.mrf.mxu0 }
 0x39b   : > { %v839_v37 = vmul.f32 0.35355338, %v740_v36  ;;  %v840_v40 = vmul.f32 0.35355338, %v786_v38 }
 0x39c   : > { %v1567_v39 = vpop.f32.mrf.mxu1  ;;  %v1573_v41 = vpop.f32.mrf.mxu0 }
 0x39d   : > { %v846_v42 = vsel %vm842_vm3, %v839_v37, -inf  ;;  %v849_v47 = vsel %vm842_vm3, %v840_v40, -inf }
 0x39e   : > { %847 = vmax.xlane.f32.xlu0 %v846_v42  ;;  %v743_v43 = vpop.f32.mrf.mxu1  ;;  %v789_v44 = vpop.f32.mrf.mxu0 }
 0x3a0   : > { %v1568_v45 = vpop.f32.mrf.mxu1  ;;  %v1574_v46 = vpop.f32.mrf.mxu0 }
 0x3a2   : > { %v832_v48 = vpop.f32.mrf.mxu1  ;;  %850 = vmax.xlane.f32.xlu0 %v849_v47  ;;  %v1759_v47 = vld [vmem:[#allocation7 + $0x8] sm:$0xff]  }
 0x3a3   : > { %v841_v49 = vmul.f32 0.35355338, %v832_v48 }
 0x3a4   : > { %v1579_v50 = vpop.f32.mrf.mxu1 }
 0x3a5   : > { %v852_v51 = vsel %vm842_vm3, %v841_v49, -inf }
 0x3a6   : > { %v835_v52 = vpop.f32.mrf.mxu1  ;;  %853 = vmax.xlane.f32.xlu0 %v852_v51 }
 0x3a8   : > { %v1580_v53 = vpop.f32.mrf.mxu1 }
 0x3b1   : > { %v845_v54 = vpop.xlane.xlu1 %844 }
 0x3b2   : > { %v855_v55 = vsub.f32 %v838_v30, %v845_v54 }
 0x3b4   : > { %v859_v56 = vmul.f32 1.442695, %v855_v55 }
 0x3b5   : > { %v1742_v59 = vpop.permute.xlu1 %1741 }
 0x3b6   : > { %1771 = vpow2.f32 %v859_v56  ;;  %v1744_v60 = vunpack.i.h.bf16 %v1742_v59  ;;  %v1743_v61 = vunpack.i.l.bf16 %v1742_v59 }
 0x3b8   : > { %v650_v62 = vpack.c.bf16 %v1744_v60, %v1743_v61  ;;  %v1760_v60 = vld [vmem:[#allocation7] sm:$0xff]  }
 0x3b9   : > { %v1752_v19 = vpop.permute.xlu1 %1751 }
 0x3ba   : > { %v1754_v28 = vunpack.i.h.bf16 %v1752_v19  ;;  %v1753_v29 = vunpack.i.l.bf16 %v1752_v19 }
 0x3bc   : > { %1746 = vrot.lane.b32.xlu0 %v1745_v20, %s1978_s29  ;;  %v652_v30 = vpack.c.bf16 %v1754_v28, %v1753_v29  ;;  %v1761_v29 = vld [vmem:[#allocation8 + $0x8] sm:$0xff]  }
 0x3c3   : > { %v1772_v57 = vpop.eup %1771 }
 0x3c4   : > { %v867_v58 = vsel %vm842_vm3, %v1772_v57, 0.0 }
 0x3c5   : > { %868 = vadd.xlane.f32.xlu1 %v867_v58 }
 0x3d6   : > { %939 = vrot.lane.b32.xlu1 %v650_v62, %s1981_s14 }
 0x427   : > { %v848_v63 = vpop.xlane.xlu0 %847 }
 0x428   : > { %v856_v0 = vsub.f32 %v839_v37, %v848_v63 }
 0x42a   : > { %v861_v1 = vmul.f32 1.442695, %v856_v0 }
 0x42b   : > { %v851_v2 = vpop.xlane.xlu0 %850 }
 0x42c   : > { %1773 = vpow2.f32 %v861_v1  ;;  %v857_v3 = vsub.f32 %v840_v40, %v851_v2 }
 0x42e   : > { %v863_v4 = vmul.f32 1.442695, %v857_v3 }
 0x42f   : > { %v854_v5 = vpop.xlane.xlu0 %853 }
 0x430   : > { %1775 = vpow2.f32 %v863_v4  ;;  %v858_v14 = vsub.f32 %v841_v49, %v854_v5 }
 0x432   : > { %v865_v16 = vmul.f32 1.442695, %v858_v14 }
 0x433   : > { %v1747_v6 = vpop.permute.xlu0 %1746 }
 0x434   : > { %v1749_v7 = vunpack.i.h.bf16 %v1747_v6  ;;  %v1748_v8 = vunpack.i.l.bf16 %v1747_v6  ;;  %1777 = vpow2.f32 %v865_v16 }
 0x436   : > { %v651_v9 = vpack.c.bf16 %v1749_v7, %v1748_v8  ;;  %v1102_v8 = vsub.s32 7, %v2177_v24 }
 0x438   : > { %986 = vrot.lane.b32.xlu1 %v651_v9, %s1981_s14  ;;  %v1103_v9 = vrot.slane %v2183_v26, %v1102_v8 }
 0x439   : > { %v1774_v10 = vpop.eup %1773 }
 0x43a   : > { %v870_v11 = vsel %vm842_vm3, %v1774_v10, 0.0 }
 0x43b   : > { %871 = vadd.xlane.f32.xlu0 %v870_v11 }
 0x43d   : > { %v1776_v12 = vpop.eup %1775 }
 0x43e   : > { %v873_v13 = vsel %vm842_vm3, %v1776_v12, 0.0 }
 0x43f   : > { %874 = vadd.xlane.f32.xlu0 %v873_v13 }
 0x441   : > { %v1778_v23 = vpop.eup %1777 }
 0x442   : > { %v876_v27 = vsel %vm842_vm3, %v1778_v23, 0.0 }
 0x44e   : > { %v869_v20 = vpop.xlane.xlu1 %868 }
 0x44f   : > { %1779 = vrcp.f32 %v869_v20 }
 0x452   : > { %v940_v22 = vpop.permute.xlu1 %939 }
 0x453   : > { %1588 = vmatpush3.bf16.msra.mxu1 %v940_v22 }
 0x454   : > { %1599 = vmatprep.subr.bf16.mxu1 %v1975_v15 }
 0x455   : > { %892 = vrot.lane.b32.xlu0 %v649_v21, %s1981_s14 }
 0x45c   : > { %877 = vadd.xlane.f32.xlu1 %v876_v27  ;;  %v1780_v32 = vpop.eup %1779 }
 0x45d   : > { %v880_v34 = vmul.f32 %v1780_v32, %v1772_v57 }
 0x45f   : > { %v887_v17 = vpack.c.bf16 %v880_v34, %v880_v34  ;;  %v1180_v34 = vsub.s32 3, %v2177_v24 }
 0x46d   : > { %1033 = vrot.lane.b32.xlu1 %v652_v30, %s1981_s14  ;;  %v1762_v30 = vld [vmem:[#allocation8] sm:$0xff]  }
 0x4aa   : > { %v987_v18 = vpop.permute.xlu1 %986 }
 0x4c4   : > { %v872_v31 = vpop.xlane.xlu0 %871 }
 0x4c5   : > { %1781 = vrcp.f32 %v872_v31 }
 0x4c8   : > { %v875_v33 = vpop.xlane.xlu0 %874 }
 0x4c9   : > { %1783 = vrcp.f32 %v875_v33  ;;  %v1175_v33 = vsub.s32 2, %v2177_v24 }
 0x4cc   : > { %v893_v36 = vpop.permute.xlu0 %892 }
 0x4cd   : > { %1582 = vmatpush3.bf16.msra.mxu0 %v893_v36  ;;  %v1176_v36 = vrot.slane %v2183_v26, %v1175_v33 }
 0x4ce   : > { %1593 = vmatprep.subr.bf16.mxu0 %v1975_v15 }
 0x4d0   : > { %1584 = vmatmul.mubr.msk.bf16.vlgmr.msra.gmra.mxu0 %vm842_vm3, %v887_v17 }
 0x4d1   : > { %1594 = vmatpush3.bf16.msra.mxu0 %v987_v18  ;;  %1595 = vmatprep.mubr.msk.bf16.mxu0 %vm1976_vm1, %v1975_v15 }
 0x4d2   : > { %v1782_v21 = vpop.eup %1781  ;;  %1605 = vmatprep.subr.bf16.mxu0 %v1975_v15 }
 0x4d3   : > { %v882_v37 = vmul.f32 %v1782_v21, %v1774_v10  ;;  %v1181_v21 = vrot.slane %v2183_v26, %v1180_v34  ;;  %v1765_v26 = vld [vmem:[%s2373_s8 + $0x8] sm:$0xff]  }
 0x4d5   : > { %v888_v38 = vpack.c.bf16 %v882_v37, %v882_v37 }
 0x4d6   : > { %v1784_v39 = vpop.eup %1783 }
 0x4d7   : > { %1590 = vmatmul.mubr.msk.bf16.vlgmr.msra.gmra.mxu1 %vm842_vm3, %v888_v38  ;;  %v884_v40 = vmul.f32 %v1784_v39, %v1776_v12 }
 0x4d8   : > { %1601 = vmatprep.mubr.msk.bf16.mxu1 %vm1976_vm1, %v1975_v15 }
 0x4d9   : > { %v889_v41 = vpack.c.bf16 %v884_v40, %v884_v40  ;;  %v1763_v40 = vld [vmem:[%s2373_s8 + $0x18] sm:$0xff]  }
 0x4db   : > { %1596 = vmatmul.mubr.msk.bf16.vlgmr.msra.gmra.mxu0 %vm842_vm3, %v889_v41  ;;  %v1764_v41 = vld [vmem:[%s2373_s8 + $0x10] sm:$0xff]  }
 0x4dc   : > { %1609 = vmatprep.mubr.msk.bf16.mxu0 %vm1976_vm1, %v1975_v15  ;;  %1606 = vmatpush3.bf16.msra.mxu0 %v1759_v47 }
 0x4dd   : > { %1607 = vmatprep.subr.bf16.mxu0 %v1975_v15 }
 0x4e0   : > { %1608 = vmatpush3.bf16.msra.mxu0 %v1760_v60 }
 0x4e1   : > { %1621 = vmatprep.subr.bf16.mxu0 %v1975_v15 }
 0x4e5   : > { %v878_v42 = vpop.xlane.xlu1 %877 }
 0x4e6   : > { %1785 = vrcp.f32 %v878_v42  ;;  %v1766_v42 = vld [vmem:[%s2373_s8] sm:$0xff]  }
 0x4e9   : > { %v1034_v43 = vpop.permute.xlu1 %1033 }
 0x4ea   : > { %1600 = vmatpush3.bf16.msra.mxu1 %v1034_v43  ;;  %v1495_v43 = vld [vmem:[%s2368_s3] ss:$0 sm:$0xff] }
 0x4eb   : > { %1613 = vmatprep.subr.bf16.mxu1 %v1975_v15 }
 0x4f3   : > { %v1786_v44 = vpop.eup %1785 }
 0x4f4   : > { %v886_v45 = vmul.f32 %v1786_v44, %v1778_v23 }
 0x4f6   : > { %v890_v46 = vpack.c.bf16 %v886_v45, %v886_v45 }
 0x4f8   : > { %1602 = vmatmul.mubr.msk.bf16.vlgmr.msra.gmra.mxu1 %vm842_vm3, %v890_v46 }
 0x4f9   : > { %1617 = vmatprep.mubr.msk.bf16.mxu1 %vm1976_vm1, %v1975_v15  ;;  %1614 = vmatpush3.bf16.msra.mxu1 %v1761_v29 }
 0x4fa   : > { %1615 = vmatprep.subr.bf16.mxu1 %v1975_v15 }
 0x4fd   : > { %1616 = vmatpush3.bf16.msra.mxu1 %v1762_v30 }
 0x590   : > { %v932_v48 = vpop.f32.mrf.mxu0 }
 0x592   : > { %v1585_v49 = vpop.f32.mrf.mxu0 }
 0x594   : > { %v935_v50 = vpop.f32.mrf.mxu0 }
 0x596   : > { %v1586_v51 = vpop.f32.mrf.mxu0 }
 0x597   : > { %v979_v52 = vpop.f32.mrf.mxu1 }
 0x598   : > { %1080 = vrot.lane.b32.xlu0 %v979_v52, %s1982_s16  ;;  %s1985_s16 = smov [#allocation10]  }
 0x599   : > { %v1591_v53 = vpop.f32.mrf.mxu1 }
 0x59b   : > { %v982_v54 = vpop.f32.mrf.mxu1  ;;  %v1026_v55 = vpop.f32.mrf.mxu0 }
 0x59c   : > { %1084 = vrot.lane.b32.xlu1 %v1026_v55, %s1983_s23  ;;  %s393_s23 = sand.u32 1, %s1959_s10   ;;  %v408_v54 = vld [vmem:[%s2367_s2 + $0x8] sm:$0xff] }
 0x59d   : > { %v1592_v56 = vpop.f32.mrf.mxu1  ;;  %v1597_v57 = vpop.f32.mrf.mxu0  ;;  %s1475_s26 = sshll.u32 %s393_s23, 3  ;;  %v1266_v55 = vrot.slane %v408_v54, %v427_v25  ;;  %s1338_s13 = scalar_lea.sflag [#allocation4], %s393_s23 }
 0x59e   : > { %s395_s27 = scalar_lea.vmem [#allocation10], %s1475_s26 }
 0x59f   : > { %v1029_v58 = vpop.f32.mrf.mxu0  ;;  %s1351_s28 = sshll.u32 %s395_s27, 4  ;;  %s2325_s28 = int_to_ptr.vmem [resolvable:$true] %s1351_s28 }
 0x5a0   : > { %s1895_s14 = scalar_lea.vmem %s2325_s28, 128 }
 0x5a1   : > { %v1598_v59 = vpop.f32.mrf.mxu0  ;;  %p1896_p9 = scmp.ne.s32.totalorder %s2325_s28, %s1895_s14 }
 0x5a3   : > { %p1897_p12 = pnand %p1896_p9, %p2074_p5 }
 0x5a5   : > { %p1898_p13 = pneg %p1897_p12 }
 0x5b8   : > { %v1073_v61 = vpop.f32.mrf.mxu1 }
 0x5b9   : > { %1088 = vrot.lane.b32.xlu0 %v1073_v61, %s1984_s17  ;;  %s1899_s17 = sshll.u32 %s1985_s16, 4  ;;  %s1900_s17 = int_to_ptr.vmem [resolvable:$false] %s1899_s17 }
 0x5ba   : > { %v1603_v62 = vpop.f32.mrf.mxu1  ;;  %s1901_s22 = scalar_lea.vmem %s1900_s17, 256  ;;  %p1902_p4 = scmp.lt.s32.totalorder %s2325_s28, %s1900_s17 }
 0x5bb   : > { %p1903_p7 = scmp.lt.s32.totalorder %s1901_s22, %s1895_s14 }
 0x5bc   : > { %v1076_v63 = vpop.f32.mrf.mxu1 }
 0x5bd   : > { %p1904_p8 = por %p1903_p7, %p1902_p4 }
 0x5be   : > { %v1604_v0 = vpop.f32.mrf.mxu1 }
 0x5bf   : > { %p1905_p11 = pnand %p1904_p8, %p1898_p13 }
 0x60a   : > { %v1081_v1 = vpop.permute.xlu0 %1080 }
 0x60b   : > { %v1091_v3 = vsel %vm653_vm2, %v932_v48, %v1081_v1 }
 0x60e   : > { %v1085_v2 = vpop.permute.xlu1 %1084 }
 0x60f   : > { %v1092_v4 = vsel %vm842_vm3, %v1091_v3, %v1085_v2 }
 0x62b   : > { %v1089_v5 = vpop.permute.xlu0 %1088 }
 0x62c   : > { %v1094_v6 = vsel %vm1093_vm4, %v1092_v4, %v1089_v5 }
 0x62d   : > { %v1095_v7 = vpack.c.bf16 %v1094_v6, %v1094_v6 }
 0x62f   : > { %1610 = vmatmul.mubr.msk.bf16.vlgmr.msra.gmra.mxu0 %vm410_vm0, %v1095_v7 }
 0x630   : > { %1629 = vmatprep.mubr.msk.bf16.mxu0 %vm1976_vm1, %v1975_v15  ;;  %1622 = vmatpush3.bf16.msra.mxu0 %v1763_v40 }
 0x631   : > { %1623 = vmatprep.subr.bf16.mxu0 %v1975_v15 }
 0x634   : > { %1624 = vmatpush3.bf16.msra.mxu0 %v1764_v41 }
 0x635   : > { %1625 = vmatprep.subr.bf16.mxu0 %v1975_v15 }
 0x638   : > { %1626 = vmatpush3.bf16.msra.mxu0 %v1765_v26 }
 0x639   : > { %1627 = vmatprep.subr.bf16.mxu0 %v1975_v15 }
 0x63c   : > { %1628 = vmatpush3.bf16.msra.mxu0 %v1766_v42 }
 0x6ef   : > { %v1153_v10 = vpop.f32.mrf.mxu0 }
 0x6f0   : > { %v1154_v11 = vadd.f32 %v1153_v10, %v1103_v9 }
 0x6f1   : > { %v1611_v12 = vpop.f32.mrf.mxu0 }
 0x6f2   : > { %v1159_v13 = vadd.f32 %v1154_v11, %v2190_v35 }
 0x6f3   : > { %v1156_v14 = vpop.f32.mrf.mxu0 }
 0x6f4   : > { %v1160_v16 = vsel %vm410_vm0, %v1159_v13, 0.0 }
 0x6f5   : > { %1161 = vadd.xlane.f32.xlu1 %v1160_v16  ;;  %v1612_v19 = vpop.f32.mrf.mxu0 }
 0x77e   : > { %v1162_v20 = vpop.xlane.xlu1 %1161 }
 0x77f   : > { %v1163_v22 = vmul.f32 0.03125, %v1162_v20 }
 0x781   : > { %v1164_v23 = vsub.f32 %v1159_v13, %v1163_v22 }
 0x783   : > { %v1165_v27 = vmul.f32 %v1164_v23, %v1164_v23 }
 0x785   : > { %v1166_v28 = vsel %vm410_vm0, %v1165_v27, 0.0 }
 0x786   : > { %1167 = vadd.xlane.f32.xlu0 %v1166_v28 }
 0x80f   : > { %v1168_v31 = vpop.xlane.xlu0 %1167 }
 0x810   : > { %v1169_v35 = vmul.f32 0.03125, %v1168_v31 }
 0x812   : > { %v1170_v32 = vadd.f32 1e-05, %v1169_v35 }
 0x814   : > { %1787 = vrsqrt.f32 %v1170_v32 }
 0x821   : > { %v1788_v17 = vpop.eup %1787 }
 0x822   : > { %v1172_v18 = vmul.f32 %v1788_v17, %v1164_v23 }
 0x824   : > { %v1177_v37 = vmul.f32 %v1176_v36, %v1172_v18 }
 0x826   : > { %v1182_v38 = vadd.f32 %v1181_v21, %v1177_v37 }
 0x828   : > { %v1183_v39 = vpack.c.bf16 %v1182_v38, %v1182_v38 }
 0x82a   : > { %1618 = vmatmul.mubr.msk.bf16.vlgmr.msra.gmra.mxu1 %vm410_vm0, %v1183_v39 }
 0x8ea   : > { %v1243_v44 = vpop.f32.mrf.mxu1 }
 0x8eb   : > { %v1244_v45 = vadd.f32 %v1495_v43, %v1243_v44 }
 0x8ec   : > { %v1619_v46 = vpop.f32.mrf.mxu1 }
 0x8ed   : > { %v1250_v47 = vmul.f32 0.70710677, %v1244_v45  ;;  %v1249_v15 = vmul.f32 0.5, %v1244_v45 }
 0x8ee   : > { %v1246_v48 = vpop.f32.mrf.mxu1 }
 0x8ef   : > { %1789 = verf.f32 %v1250_v47 }
 0x8f0   : > { %v1620_v49 = vpop.f32.mrf.mxu1 }
 0x8fc   : > { %v1790_v50 = vpop.eup %1789 }
 0x8fd   : > { %v1252_v51 = vadd.f32 1.0, %v1790_v50 }
 0x8ff   : > { %v1253_v52 = vmul.f32 %v1252_v51, %v1249_v15 }
 0x901   : > { %v1254_v53 = vpack.c.bf16 %v1253_v52, %v1253_v52 }
 0x903   : > { %1630 = vmatmul.mubr.msk.bf16.vlgmr.msra.gmra.mxu0 %vm1291_vm5, %v1254_v53 }
 0x9c3   : > { %v1329_v56 = vpop.f32.mrf.mxu0 }
 0x9c4   : > { %v1330_v57 = vadd.f32 %v1329_v56, %v1266_v55 }
 0x9c5   : > { %v1631_v58 = vpop.f32.mrf.mxu0 }
 0x9c6   : > { %v1335_v59 = vadd.f32 %v1330_v57, %v1182_v38 }
 0x9c7   : > { %v1332_v24 = vpop.f32.mrf.mxu0 }
 0x9c8   : > { %1336 = vst.msk [vmem:[%s395_s27] sm:$0xff] %vm410_vm0, %v1335_v59 }
 0x9c9   : > { %v1632_v25 = vpop.f32.mrf.mxu0 }
 0x9ca   : > { %1908 = shalt.err (!%p1905_p11)
}
 0x9cb   : > { %s1909_s26 = scalar_lea.hbm %s2323_s24, 128  ;;  %s1913_s27 = scalar_lea.hbm %s2374_s9, 256 }
 0x9cc   : > { %p1910_p0 = scmp.ne.s32.totalorder %s2323_s24, %s1909_s26  ;;  %p1914_p3 = scmp.lt.s32.totalorder %s2323_s24, %s2374_s9 }
 0x9cd   : > { %p1915_p10 = scmp.lt.s32.totalorder %s1913_s27, %s1909_s26 }
 0x9ce   : > { %p1911_p2 = pnand %p1910_p0, %p2074_p5 }
 0x9cf   : > { %p1916_p9 = por %p1915_p10, %p1914_p3 }
 0x9d0   : > { %p1912_p1 = pneg %p1911_p2 }
 0x9d2   : > { %p1917_p12 = pnand %p1916_p9, %p1912_p1 }
 0x9d4   : > { %1920 = shalt.err (!%p1917_p12)
}
 0x9d5   : > { %1649 = dma.vmem_to_hbm [thread:$0]  (%p2074_p5), %s2325_s28, 128, %s2323_s24, %s1338_s13  }
 0x9d6 PF: > { %p1676_p13 = scmp.ge.s32.totalorder %s1967_s12, 2  ;;  %s1363_s14 = sand.u32 1, %s1955_s30  }
 0x9d7   : > { %s1364_s16 = scalar_lea.sflag [#allocation4], %s1363_s14 }
 0x9d8   : > { %p1665_p4 = pnand %p1676_p13, %p2078_p6 }
 0x9da   : > { %p1666_p7 = pneg %p1665_p4 }
 0x9dc   : > { %1950 = dma.done.wait (%p1666_p7), %s1364_s16, 128  }
 0x9dd   : > { %1952 = vsyncadd (%p1666_p7), %s1364_s16, 4294967168  ;;  %p22_p8 = scmp.ge.s32.totalorder %s2061_s15, 4   ;;  %s2379_s30 = smov %s1959_s10 }
 0x9de   : > { %s2380_s10 = smov %s1963_s11  ;;  %s2381_s11 = smov %s2072_s18 }
 0x9df   : > { %s2382_s12 = smov %s2061_s15  ;;  %24 = sbr.rel (!%p22_p8) target bundleno = 6 (0x6), region = 111 }
 0x9e4   :  { %1369 = vsyncpa [#allocation3], 1 }
 0x9e5   :  { %1371 = vsyncpa [#allocation3 + $0x1], 1 }
 0x9e6   :  { %1372 = vsyncpa [#allocation6], 1 }
 0x9e7   :  { %1373 = vsyncpa [#allocation9], 1 }
 0x9e8   :  { %1374 = vsyncpa [#allocation4], 1 }
 0x9e9   :  { %1376 = vsyncpa [#allocation4 + $0x1], 1 }

</bundles_post_ra>
